<compile_context>
chip_gen: v7x
topology: tpu7x:2x2x1
jax: 0.10.0
libtpu: 0.0.40
codegen_flags: <defaults>
</compile_context>

<pallas_src>
import functools

import jax
import jax.numpy as jnp
from jax.experimental import pallas as pl
from jax.experimental.pallas import tpu as pltpu

# Logical (PyTorch) dims and padded (kernel) dims.
D_IN, D_H1, D_H2, D_OUT = 211, 512, 256, 40
D_IN_PAD, D_OUT_PAD = 256, 128
TB_ALIGN = 16  # sublane alignment covering both f32 (8) and bf16 (16) blocks


def _round_up(x, m):
    return ((x + m - 1) // m) * m


def qnet_kernel(x_ref, w1_ref, b1_ref, w2_ref, b2_ref, w3_ref, b3_ref,
                o_ref, xpad_ref):
    tb = x_ref.shape[0]
    # In-kernel bf16 cast + zero-extension of the 211-feature input to the
    # 256-lane padded contraction dim (cheap VPU filler under MXU slack;
    # replaces the old wrapper-side pad/cast HBM pass).
    xpad_ref[:, D_IN:] = jnp.zeros((tb, D_IN_PAD - D_IN), jnp.bfloat16)
    xpad_ref[:, :D_IN] = x_ref[...].astype(jnp.bfloat16)

    # Layer 1: (tb, 256) @ (256, 512) + (1, 512), ReLU   (bf16 in, f32 acc)
    h1 = jnp.dot(xpad_ref[...], w1_ref[...], preferred_element_type=jnp.float32)
    h1 = jnp.maximum(h1 + b1_ref[...], 0.0)
    # Layer 2: (tb, 512) @ (512, 256) + (1, 256), ReLU
    h2 = jnp.dot(h1.astype(jnp.bfloat16), w2_ref[...],
                 preferred_element_type=jnp.float32)
    h2 = jnp.maximum(h2 + b2_ref[...], 0.0)
    # Layer 3: (tb, 256) @ (256, 128) + (1, 128)  (last 88 output lanes padding)
    out = jnp.dot(h2.astype(jnp.bfloat16), w3_ref[...],
                  preferred_element_type=jnp.float32)
    o_ref[...] = (out + b3_ref[...]).astype(o_ref.dtype)


def prepare_kernel_params(params):
    """ONE-TIME weight prep (call once, reuse across forwards).

    Pads ragged dims (K 211->256, out 40->128) with zeros and casts weights to
    bf16; biases stay f32 (bias add / ReLU run in f32 inside the kernel).
    Weights are stored (in_features, out_features), i.e. the transpose of
    PyTorch's nn.Linear.weight, so y = x @ W + b.
    """
    w1 = jnp.zeros((D_IN_PAD, D_H1), jnp.bfloat16)
    w1 = w1.at[:D_IN, :].set(params["w1"].astype(jnp.bfloat16))
    b1 = params["b1"].astype(jnp.float32)

    w2 = params["w2"].astype(jnp.bfloat16)
    b2 = params["b2"].astype(jnp.float32)

    w3 = jnp.zeros((D_H2, D_OUT_PAD), jnp.bfloat16)
    w3 = w3.at[:, :D_OUT].set(params["w3"].astype(jnp.bfloat16))
    b3 = jnp.zeros((1, D_OUT_PAD), jnp.float32)
    b3 = b3.at[:, :D_OUT].set(params["b3"].astype(jnp.float32))

    return (w1, b1, w2, b2, w3, b3)


@functools.partial(jax.jit, static_argnames=("block_batch", "min_blocks"))
def qnet_forward(x, kparams, *, block_batch=1024, min_blocks=2):
    """x: (B, 211) f32. kparams: output of prepare_kernel_params. Returns (B, 40) f32."""
    B = x.shape[0]
    # Batch tile: multiple of 16 sublanes, capped so the grid has >= min_blocks
    # steps when the batch allows it (lets the "parallel" axis split across
    # v7x's two TensorCores), and never larger than block_batch.
    tb_cap = _round_up(max(1, pl.cdiv(B, min_blocks)), TB_ALIGN)
    tb = max(TB_ALIGN, min(block_batch, tb_cap))
    n_blocks = pl.cdiv(B, tb)
    b_pad = n_blocks * tb

    # Only pad the batch when it isn't already a multiple of the tile.
    x_p = x if b_pad == B else jnp.pad(x, ((0, b_pad - B), (0, 0)))

    w1, b1, w2, b2, w3, b3 = kparams

    def resident(shape):
        # Whole-array block, same block index every grid step -> DMA'd once.
        return pl.BlockSpec(shape, lambda i, _n=len(shape): (0,) * _n)

    out_padded = pl.pallas_call(
        qnet_kernel,
        out_shape=jax.ShapeDtypeStruct((b_pad, D_OUT_PAD), jnp.bfloat16),
        grid=(n_blocks,),
        in_specs=[
            # x: batch-tiled, raw 211 lanes (last dim == full array dim).
            pl.BlockSpec((tb, D_IN), lambda i: (i, 0)),
            resident(w1.shape), resident(b1.shape),
            resident(w2.shape), resident(b2.shape),
            resident(w3.shape), resident(b3.shape),
        ],
        out_specs=pl.BlockSpec((tb, D_OUT_PAD), lambda i: (i, 0)),
        scratch_shapes=[pltpu.VMEM((tb, D_IN_PAD), jnp.bfloat16)],
        compiler_params=pltpu.CompilerParams(
            # "parallel" batch axis -> megacore sharding on v7x's 2 TCs.
            dimension_semantics=("parallel",),
            vmem_limit_bytes=32 << 20,
        ),
    )(x_p, w1, b1, w2, b2, w3, b3)

    # Strip batch / output-lane padding; return f32 like the PyTorch module.
    return out_padded[:B, :D_OUT].astype(jnp.float32)


def init_params(key):
    """Deterministic init mimicking nn.Linear default (uniform +/- 1/sqrt(fan_in)).

    Weights are stored (in_features, out_features), i.e. the transpose of
    PyTorch's nn.Linear weight, so y = x @ W + b.
    """
    dims = [(D_IN, D_H1), (D_H1, D_H2), (D_H2, D_OUT)]
    params = {}
    for idx, (fan_in, fan_out) in enumerate(dims, start=1):
        key, kw, kb = jax.random.split(key, 3)
        bound = 1.0 / jnp.sqrt(float(fan_in))
        params[f"w{idx}"] = jax.random.uniform(
            kw, (fan_in, fan_out), jnp.float32, -bound, bound)
        params[f"b{idx}"] = jax.random.uniform(
            kb, (1, fan_out), jnp.float32, -bound, bound)
    return params


def qnet_reference(x, params):
    """Pure-JAX reference using the same bf16-weight / f32-accumulate recipe."""
    xb = x.astype(jnp.bfloat16)
    h1 = jnp.dot(xb, params["w1"].astype(jnp.bfloat16),
                 preferred_element_type=jnp.float32) + params["b1"]
    h1 = jnp.maximum(h1, 0.0)
    h2 = jnp.dot(h1.astype(jnp.bfloat16), params["w2"].astype(jnp.bfloat16),
                 preferred_element_type=jnp.float32) + params["b2"]
    h2 = jnp.maximum(h2, 0.0)
    return jnp.dot(h2.astype(jnp.bfloat16), params["w3"].astype(jnp.bfloat16),
                   preferred_element_type=jnp.float32) + params["b3"]


if __name__ == "__main__":
    key = jax.random.PRNGKey(0)
    key, kx = jax.random.split(key)
    B = 8
    x = jax.random.normal(kx, (B, D_IN), dtype=jnp.float32)
    params = init_params(key)

    # One-time weight prep (pad + bf16 cast), hoisted out of the forward path.
    kparams = jax.block_until_ready(prepare_kernel_params(params))

    out = qnet_forward(x, kparams)
    out = jax.block_until_ready(out)

    ref = qnet_reference(x, params)
    assert out.shape == (B, D_OUT), out.shape
    # NOTE: bf16 weights/activations + bf16 output store change numerics vs an
    # f32 PyTorch QNet by ~1e-2 relative; intentional for MXU throughput.
    assert jnp.allclose(out, ref, atol=3e-2, rtol=3e-2), "mismatch vs reference"
    print("KERNEL_OK")
</pallas_src>

<mosaic_0001>
module attributes {stable_mosaic.version = 11 : i64} {
  func.func @qnet_kernel(%arg0: i32, %arg1: memref<16x211xf32, #tpu.memory_space<vmem>>, %arg2: memref<256x512xbf16, #tpu.memory_space<vmem>>, %arg3: memref<1x512xf32, #tpu.memory_space<vmem>>, %arg4: memref<512x256xbf16, #tpu.memory_space<vmem>>, %arg5: memref<1x256xf32, #tpu.memory_space<vmem>>, %arg6: memref<256x128xbf16, #tpu.memory_space<vmem>>, %arg7: memref<1x128xf32, #tpu.memory_space<vmem>>, %arg8: memref<16x128xbf16, #tpu.memory_space<vmem>>, %arg9: memref<16x256xbf16, #tpu.memory_space<vmem>>) attributes {dimension_semantics = [#tpu.dimension_semantics<parallel>], iteration_bounds = array<i64: 1>, scalar_prefetch = 0 : i64, scratch_operands = 1 : i64, tpu.core_type = #tpu.core_type<tc>, window_params = [{transform_indices = @transform_0, window_bounds = array<i64: 16, 211>}, {pipeline_mode = #tpu.pipeline_mode<synchronous>, transform_indices = @transform_1, window_bounds = array<i64: 256, 512>}, {pipeline_mode = #tpu.pipeline_mode<synchronous>, transform_indices = @transform_2, window_bounds = array<i64: 1, 512>}, {pipeline_mode = #tpu.pipeline_mode<synchronous>, transform_indices = @transform_3, window_bounds = array<i64: 512, 256>}, {pipeline_mode = #tpu.pipeline_mode<synchronous>, transform_indices = @transform_4, window_bounds = array<i64: 1, 256>}, {pipeline_mode = #tpu.pipeline_mode<synchronous>, transform_indices = @transform_5, window_bounds = array<i64: 256, 128>}, {pipeline_mode = #tpu.pipeline_mode<synchronous>, transform_indices = @transform_6, window_bounds = array<i64: 1, 128>}, {transform_indices = @transform_7, window_bounds = array<i64: 16, 128>}]} {
    %cst = arith.constant 0.000000e+00 : bf16
    %0 = vector.broadcast %cst : bf16 to vector<16x45xbf16>
    %c0 = arith.constant 0 : index
    %c211 = arith.constant 211 : index
    %1 = vector.load %arg9[%c0, %c211] : memref<16x256xbf16, #tpu.memory_space<vmem>>, vector<16x45xbf16>
    tpu.vector_store %arg9[%c0, %c211], %0 {strides = array<i32>} : memref<16x256xbf16, #tpu.memory_space<vmem>>, vector<16x45xbf16>,
    %c0_0 = arith.constant 0 : index
    %c0_1 = arith.constant 0 : index
    %2 = vector.load %arg1[%c0_0, %c0_1] : memref<16x211xf32, #tpu.memory_space<vmem>>, vector<16x211xf32>
    %3 = arith.truncf %2 : vector<16x211xf32> to vector<16x211xbf16>
    %c0_2 = arith.constant 0 : index
    %c0_3 = arith.constant 0 : index
    %4 = vector.load %arg9[%c0_2, %c0_3] : memref<16x256xbf16, #tpu.memory_space<vmem>>, vector<16x211xbf16>
    tpu.vector_store %arg9[%c0_2, %c0_3], %3 {strides = array<i32>} : memref<16x256xbf16, #tpu.memory_space<vmem>>, vector<16x211xbf16>,
    %c0_4 = arith.constant 0 : index
    %c0_5 = arith.constant 0 : index
    %5 = vector.load %arg9[%c0_4, %c0_5] : memref<16x256xbf16, #tpu.memory_space<vmem>>, vector<16x256xbf16>
    %c0_6 = arith.constant 0 : index
    %c0_7 = arith.constant 0 : index
    %6 = vector.load %arg2[%c0_6, %c0_7] : memref<256x512xbf16, #tpu.memory_space<vmem>>, vector<256x512xbf16>
    %cst_8 = arith.constant dense<0.000000e+00> : vector<16x512xf32>
    %7 = tpu.matmul %5, %6, %cst_8 {dimension_numbers = #tpu.dot_dimension_numbers<[1], [0], [0], [1], [0, 0, 1, 1], [], []>} : vector<16x256xbf16>, vector<256x512xbf16>, vector<16x512xf32> -> vector<16x512xf32>
    %c0_9 = arith.constant 0 : index
    %c0_10 = arith.constant 0 : index
    %8 = vector.load %arg3[%c0_9, %c0_10] : memref<1x512xf32, #tpu.memory_space<vmem>>, vector<1x512xf32>
    %9 = vector.broadcast %8 : vector<1x512xf32> to vector<16x512xf32>
    %10 = arith.addf %7, %9 : vector<16x512xf32>
    %cst_11 = arith.constant 0.000000e+00 : f32
    %11 = vector.broadcast %cst_11 : f32 to vector<16x512xf32>
    %12 = arith.maximumf %10, %11 : vector<16x512xf32>
    %13 = arith.truncf %12 : vector<16x512xf32> to vector<16x512xbf16>
    %c0_12 = arith.constant 0 : index
    %c0_13 = arith.constant 0 : index
    %14 = vector.load %arg4[%c0_12, %c0_13] : memref<512x256xbf16, #tpu.memory_space<vmem>>, vector<512x256xbf16>
    %cst_14 = arith.constant dense<0.000000e+00> : vector<16x256xf32>
    %15 = tpu.matmul %13, %14, %cst_14 {dimension_numbers = #tpu.dot_dimension_numbers<[1], [0], [0], [1], [0, 0, 1, 1], [], []>} : vector<16x512xbf16>, vector<512x256xbf16>, vector<16x256xf32> -> vector<16x256xf32>
    %c0_15 = arith.constant 0 : index
    %c0_16 = arith.constant 0 : index
    %16 = vector.load %arg5[%c0_15, %c0_16] : memref<1x256xf32, #tpu.memory_space<vmem>>, vector<1x256xf32>
    %17 = vector.broadcast %16 : vector<1x256xf32> to vector<16x256xf32>
    %18 = arith.addf %15, %17 : vector<16x256xf32>
    %cst_17 = arith.constant 0.000000e+00 : f32
    %19 = vector.broadcast %cst_17 : f32 to vector<16x256xf32>
    %20 = arith.maximumf %18, %19 : vector<16x256xf32>
    %21 = arith.truncf %20 : vector<16x256xf32> to vector<16x256xbf16>
    %c0_18 = arith.constant 0 : index
    %c0_19 = arith.constant 0 : index
    %22 = vector.load %arg6[%c0_18, %c0_19] : memref<256x128xbf16, #tpu.memory_space<vmem>>, vector<256x128xbf16>
    %cst_20 = arith.constant dense<0.000000e+00> : vector<16x128xf32>
    %23 = tpu.matmul %21, %22, %cst_20 {dimension_numbers = #tpu.dot_dimension_numbers<[1], [0], [0], [1], [0, 0, 1, 1], [], []>} : vector<16x256xbf16>, vector<256x128xbf16>, vector<16x128xf32> -> vector<16x128xf32>
    %c0_21 = arith.constant 0 : index
    %c0_22 = arith.constant 0 : index
    %24 = vector.load %arg7[%c0_21, %c0_22] : memref<1x128xf32, #tpu.memory_space<vmem>>, vector<1x128xf32>
    %25 = vector.broadcast %24 : vector<1x128xf32> to vector<16x128xf32>
    %26 = arith.addf %23, %25 : vector<16x128xf32>
    %27 = arith.truncf %26 : vector<16x128xf32> to vector<16x128xbf16>
    %c0_23 = arith.constant 0 : index
    %c0_24 = arith.constant 0 : index
    %28 = vector.load %arg8[%c0_23, %c0_24] : memref<16x128xbf16, #tpu.memory_space<vmem>>, vector<16x128xbf16>
    tpu.vector_store %arg8[%c0_23, %c0_24], %27 {strides = array<i32>} : memref<16x128xbf16, #tpu.memory_space<vmem>>, vector<16x128xbf16>,
    return
  }
  func.func @transform_0(%arg0: i32) -> (i32, i32) {
    %c0_i32 = arith.constant 0 : i32
    %c0_i32_0 = arith.constant 0 : i32
    return %arg0, %c0_i32 : i32, i32
  }
  func.func @transform_1(%arg0: i32) -> (i32, i32) {
    %c0_i32 = arith.constant 0 : i32
    %c0_i32_0 = arith.constant 0 : i32
    %c0_i32_1 = arith.constant 0 : i32
    return %c0_i32, %c0_i32_0 : i32, i32
  }
  func.func @transform_2(%arg0: i32) -> (i32, i32) {
    %c0_i32 = arith.constant 0 : i32
    %c0_i32_0 = arith.constant 0 : i32
    %c0_i32_1 = arith.constant 0 : i32
    return %c0_i32, %c0_i32_0 : i32, i32
  }
  func.func @transform_3(%arg0: i32) -> (i32, i32) {
    %c0_i32 = arith.constant 0 : i32
    %c0_i32_0 = arith.constant 0 : i32
    %c0_i32_1 = arith.constant 0 : i32
    return %c0_i32, %c0_i32_0 : i32, i32
  }
  func.func @transform_4(%arg0: i32) -> (i32, i32) {
    %c0_i32 = arith.constant 0 : i32
    %c0_i32_0 = arith.constant 0 : i32
    %c0_i32_1 = arith.constant 0 : i32
    return %c0_i32, %c0_i32_0 : i32, i32
  }
  func.func @transform_5(%arg0: i32) -> (i32, i32) {
    %c0_i32 = arith.constant 0 : i32
    %c0_i32_0 = arith.constant 0 : i32
    %c0_i32_1 = arith.constant 0 : i32
    return %c0_i32, %c0_i32_0 : i32, i32
  }
  func.func @transform_6(%arg0: i32) -> (i32, i32) {
    %c0_i32 = arith.constant 0 : i32
    %c0_i32_0 = arith.constant 0 : i32
    %c0_i32_1 = arith.constant 0 : i32
    return %c0_i32, %c0_i32_0 : i32, i32
  }
  func.func @transform_7(%arg0: i32) -> (i32, i32) {
    %c0_i32 = arith.constant 0 : i32
    %c0_i32_0 = arith.constant 0 : i32
    return %arg0, %c0_i32 : i32, i32
  }
}

</mosaic_0001>

<bundles_post_ra>
// kernel: qnet_forward.1
= control target key start
LH: loop header
LB: loop body
LE: loop exit
PB: predicated region body
PF: predicated region fallthrough
CT: control target
= control target key end

     0   :  { %12 = vsyncpa [#allocation4], 0  ;;  %s1875_s0 = inlined_call_operand.vmem [shape: f32[16,211], index: 0, kind: input, shape index: {}]   ;;  %s1876_s1 = inlined_call_operand.hbm [shape: bf16[256,512], index: 1, kind: input, shape index: {}]   ;;  %s1877_s2 = inlined_call_operand.vmem [shape: f32[1,512], index: 2, kind: input, shape index: {}]   ;;  %s1878_s3 = inlined_call_operand.hbm [shape: bf16[512,256], index: 3, kind: input, shape index: {}]   ;;  %s1879_s4 = inlined_call_operand.vmem [shape: f32[1,256], index: 4, kind: input, shape index: {}]   ;;  %s1880_s5 = inlined_call_operand.hbm [shape: bf16[256,128], index: 5, kind: input, shape index: {}]   ;;  %s1881_s6 = inlined_call_operand.vmem [shape: f32[1,128], index: 6, kind: input, shape index: {}]   ;;  %s1882_s7 = inlined_call_operand.vmem [shape: bf16[16,128], index: 7, kind: output, shape index: {}]  }
   0x1   :  { %13 = vsyncpa [#allocation6], 0  ;;  %s1737_s24 = smov [#allocation5]   ;;  %s1667_s28 = scalar_lea.hbm %s1878_s3, 8192 }
   0x2   :  { %s35_s25 = sshll.u32 %s1737_s24, 4  ;;  %p1668_p0 = scmp.ne.s32.totalorder %s1878_s3, %s1667_s28  ;;  %s36_s25 = int_to_ptr.vmem [resolvable:$true] %s35_s25 }
   0x3   :  { %p1671_p1 = scmp.lt.u32.totalorder %s1667_s28, %s1878_s3 }
   0x5   :  { %p1673_p2 = pnand %p1671_p1, %p1668_p0 }
   0x7   :  { %1676 = shalt.err (!%p1673_p2)
}
   0x8   :  { %s1677_s10 = scalar_lea.vmem %s36_s25, 8192  ;;  %p1682_p4 = scmp.lt.s32.totalorder %s36_s25, %s36_s25 }
   0x9   :  { %p1678_p3 = scmp.ne.s32.totalorder %s36_s25, %s1677_s10  ;;  %p1683_p5 = scmp.lt.s32.totalorder %s1677_s10, %s1677_s10 }
   0xb   :  { %p1684_p6 = por %p1683_p5, %p1682_p4 }
   0xd   :  { %p1685_p7 = pnand %p1684_p6, %p1678_p3 }
   0xf   :  { %1688 = shalt.err (!%p1685_p7)
}
  0x10   :  { %s1738_s11 = smov 128   ;;  %s1739_s12 = smov 8  }
  0x11   :  { %41 = dma.hbm_to_vmem [thread:$0]  %s1878_s3, 8192, %s36_s25, [#allocation6], %s1738_s11, %s1738_s11, %s1739_s12  }
  0x12   :  { %s1740_s15 = smov [#allocation3]   ;;  %s1689_s19 = scalar_lea.hbm %s1876_s1, 8192 }
  0x13   :  { %s21_s16 = sshll.u32 %s1740_s15, 4  ;;  %p1690_p8 = scmp.ne.s32.totalorder %s1876_s1, %s1689_s19  ;;  %s22_s16 = int_to_ptr.vmem [resolvable:$true] %s21_s16 }
  0x14   :  { %p1693_p9 = scmp.lt.u32.totalorder %s1689_s19, %s1876_s1 }
  0x16   :  { %p1695_p10 = pnand %p1693_p9, %p1690_p8 }
  0x18   :  { %1698 = shalt.err (!%p1695_p10)
}
  0x19   :  { %s1699_s24 = scalar_lea.vmem %s22_s16, 8192  ;;  %p1704_p12 = scmp.lt.s32.totalorder %s22_s16, %s22_s16 }
  0x1a   :  { %p1700_p11 = scmp.ne.s32.totalorder %s22_s16, %s1699_s24  ;;  %p1705_p13 = scmp.lt.s32.totalorder %s1699_s24, %s1699_s24 }
  0x1c   :  { %p1706_p0 = por %p1705_p13, %p1704_p12 }
  0x1e   :  { %p1707_p1 = pnand %p1706_p0, %p1700_p11 }
  0x20   :  { %1710 = shalt.err (!%p1707_p1)
}
  0x21   :  { %s1741_s3 = smov 256   ;;  %s1742_s25 = smov 16  }
  0x22   :  { %27 = dma.hbm_to_vmem [thread:$0]  %s1876_s1, 8192, %s22_s16, [#allocation4], %s1741_s3, %s1741_s3, %s1742_s25  }
  0x23   :  { %s1743_s28 = smov [#allocation7]   ;;  %s1711_s9 = scalar_lea.hbm %s1880_s5, 2048 }
  0x24   :  { %s49_s29 = sshll.u32 %s1743_s28, 4  ;;  %p1712_p2 = scmp.ne.s32.totalorder %s1880_s5, %s1711_s9  ;;  %s50_s29 = int_to_ptr.vmem [resolvable:$true] %s49_s29 }
  0x25   :  { %p1715_p3 = scmp.lt.u32.totalorder %s1711_s9, %s1880_s5 }
  0x27   :  { %p1717_p4 = pnand %p1715_p3, %p1712_p2 }
  0x29   :  { %1720 = shalt.err (!%p1717_p4)
}
  0x2a   :  { %s1721_s14 = scalar_lea.vmem %s50_s29, 2048  ;;  %p1726_p6 = scmp.lt.s32.totalorder %s50_s29, %s50_s29 }
  0x2b   :  { %p1722_p5 = scmp.ne.s32.totalorder %s50_s29, %s1721_s14  ;;  %p1727_p7 = scmp.lt.s32.totalorder %s1721_s14, %s1721_s14 }
  0x2d   :  { %p1728_p8 = por %p1727_p7, %p1726_p6 }
  0x2f   :  { %p1729_p9 = pnand %p1728_p8, %p1722_p5 }
  0x31   :  { %1732 = shalt.err (!%p1729_p9)
}
  0x32   :  { %s1744_s1 = smov 64   ;;  %s1745_s15 = smov 4  }
  0x33   :  { %55 = dma.hbm_to_vmem [thread:$0]  %s1880_s5, 2048, %s50_s29, [#allocation6], %s1744_s1, %s1744_s1, %s1745_s15  }
  0x34   :  { %1733 = dma.done.wait [#allocation4], 8192  }
  0x35   :  { %1734 = vsyncadd [#allocation4], 4294959104 }
  0x36   :  { %1735 = dma.done.wait [#allocation6], 10240  }
  0x37   :  { %1736 = vsyncadd [#allocation6], 4294957056  ;;  %vm68_vm0 = vcmask 1048216   ;;  %v1746_v0 = vmov 0   ;;  %v1459_v1 = vld [vmem:[#allocation3 + $0x4] ss:$16 sps:$4 sm:$0xff]  }
  0x38   :  { %69 = vst.msk [vmem:[#allocation2 + $0x8] sm:$0xff] %vm68_vm0, %v1746_v0  ;;  %v1461_v2 = vld [vmem:[#allocation3] ss:$16 sps:$4 sm:$0xff]   ;;  %487 = vmatprep.subr.bf16.mxu1 %v1459_v1  ;;  %v1462_v3 = vld [vmem:[#allocation3 + $0x24] ss:$16 sps:$4 sm:$0xff]   ;;  %v71_v14 = vld [vmem:[%s1875_s0 + $0x8] sm:$0xff] }
  0x39   :  { %488 = vmatpush1.bf16.msra.mxu1 %v1461_v2  ;;  %v1464_v4 = vld [vmem:[#allocation3 + $0x20] ss:$16 sps:$4 sm:$0xff]   ;;  %v1465_v5 = vld [vmem:[#allocation3 + $0x44] ss:$16 sps:$4 sm:$0xff]   ;;  %v73_v15 = vld [vmem:[%s1875_s0 + $0x18] sm:$0xff]  ;;  %vm77_vm1 = vcmask 678912  }
  0x3a   :  { %489 = vmatprep.subr.bf16.mxu1 %v1462_v3  ;;  %v1467_v6 = vld [vmem:[#allocation3 + $0x40] ss:$16 sps:$4 sm:$0xff]   ;;  %v1468_v7 = vld [vmem:[#allocation3 + $0x64] ss:$16 sps:$4 sm:$0xff]   ;;  %v75_v16 = vpack.c.bf16 %v73_v15, %v71_v14  ;;  %v1509_v49 = vld [vmem:[#allocation3 + $0xc] ss:$16 sps:$4 sm:$0xff]  }
  0x3b   :  { %v1470_v8 = vld [vmem:[#allocation3 + $0x60] ss:$16 sps:$4 sm:$0xff]   ;;  %v1471_v9 = vld [vmem:[#allocation3 + $0x84] ss:$16 sps:$4 sm:$0xff]   ;;  %v1507_v51 = vld [vmem:[#allocation3 + $0x8] ss:$16 sps:$4 sm:$0xff]  }
  0x3c   :  { %v1473_v10 = vld [vmem:[#allocation3 + $0x80] ss:$16 sps:$4 sm:$0xff]   ;;  %v1474_v11 = vld [vmem:[#allocation3 + $0xa4] ss:$16 sps:$4 sm:$0xff]   ;;  %78 = vst.msk [vmem:[#allocation2 + $0x8] sm:$0xff] %vm77_vm1, %v75_v16 }
  0x3d   :  { %490 = vmatpush1.bf16.msra.mxu1 %v1464_v4  ;;  %v1476_v12 = vld [vmem:[#allocation3 + $0xa0] ss:$16 sps:$4 sm:$0xff]   ;;  %v1477_v13 = vld [vmem:[#allocation3 + $0xc4] ss:$16 sps:$4 sm:$0xff]   ;;  %v1512_v53 = vld [vmem:[#allocation3 + $0x2c] ss:$16 sps:$4 sm:$0xff]  }
  0x3e   :  { %491 = vmatprep.subr.bf16.mxu1 %v1465_v5  ;;  %v70_v17 = vld [vmem:[%s1875_s0] sm:$0xff]  ;;  %v72_v18 = vld [vmem:[%s1875_s0 + $0x10] sm:$0xff]  ;;  %v1510_v56 = vld [vmem:[#allocation3 + $0x28] ss:$16 sps:$4 sm:$0xff]  }
  0x3f   :  { %v1479_v19 = vld [vmem:[#allocation3 + $0xc0] ss:$16 sps:$4 sm:$0xff]   ;;  %v1835_v20 = vpack.c.bf16 %v72_v18, %v70_v17  ;;  %v1480_v21 = vld [vmem:[#allocation3 + $0xe4] ss:$16 sps:$4 sm:$0xff]   ;;  %v1515_v57 = vld [vmem:[#allocation3 + $0x4c] ss:$16 sps:$4 sm:$0xff]  }
  0x40   :  { %v1482_v22 = vld [vmem:[#allocation3 + $0xe0] ss:$16 sps:$4 sm:$0xff]   ;;  %v1483_v23 = vld [vmem:[#allocation3 + $0x104] ss:$16 sps:$4 sm:$0xff]   ;;  %v1513_v60 = vld [vmem:[#allocation3 + $0x48] ss:$16 sps:$4 sm:$0xff]  }
  0x41   :  { %492 = vmatpush1.bf16.msra.mxu1 %v1467_v6  ;;  %v1485_v24 = vld [vmem:[#allocation3 + $0x100] ss:$16 sps:$4 sm:$0xff]   ;;  %v1486_v26 = vld [vmem:[#allocation3 + $0x124] ss:$16 sps:$4 sm:$0xff]   ;;  %v1518_v61 = vld [vmem:[#allocation3 + $0x6c] ss:$16 sps:$4 sm:$0xff]  }
  0x42   :  { %493 = vmatprep.subr.bf16.mxu1 %v1468_v7  ;;  %v1488_v27 = vld [vmem:[#allocation3 + $0x120] ss:$16 sps:$4 sm:$0xff]   ;;  %v1489_v28 = vld [vmem:[#allocation3 + $0x144] ss:$16 sps:$4 sm:$0xff]   ;;  %v1516_v0 = vld [vmem:[#allocation3 + $0x68] ss:$16 sps:$4 sm:$0xff]  }
  0x43   :  { %v1837_v25 = vld [vmem:[#allocation2 + $0x8] sm:$0xff]  ;;  %v1491_v29 = vld [vmem:[#allocation3 + $0x140] ss:$16 sps:$4 sm:$0xff]   ;;  %v1492_v30 = vld [vmem:[#allocation3 + $0x164] ss:$16 sps:$4 sm:$0xff]  }
  0x44   :  { %519 = vmatprep.mubr.bf16.mxu1 %v1837_v25  ;;  %v1494_v31 = vld [vmem:[#allocation3 + $0x160] ss:$16 sps:$4 sm:$0xff]   ;;  %v1495_v32 = vld [vmem:[#allocation3 + $0x184] ss:$16 sps:$4 sm:$0xff]   ;;  %v1521_v1 = vld [vmem:[#allocation3 + $0x8c] ss:$16 sps:$4 sm:$0xff]  }
  0x45   :  { %494 = vmatpush1.bf16.msra.mxu1 %v1470_v8  ;;  %v1555_v33 = vld [vmem:[#allocation5 + $0x4] ss:$8 sps:$4 sm:$0xff]   ;;  %v1557_v34 = vld [vmem:[#allocation5] ss:$8 sps:$4 sm:$0xff]   ;;  %v1558_v36 = vld [vmem:[#allocation5 + $0x14] ss:$8 sps:$4 sm:$0xff]  }
  0x46   :  { %495 = vmatprep.subr.bf16.mxu1 %v1471_v9  ;;  %v1497_v35 = vld [vmem:[#allocation3 + $0x180] ss:$16 sps:$4 sm:$0xff]   ;;  %v1498_v37 = vld [vmem:[#allocation3 + $0x1a4] ss:$16 sps:$4 sm:$0xff]   ;;  %981 = vmatprep.subr.bf16.mxu0 %v1555_v33  ;;  %v1519_v4 = vld [vmem:[#allocation3 + $0x88] ss:$16 sps:$4 sm:$0xff]  }
  0x47   :  { %982 = vmatpush1.bf16.msra.mxu0 %v1557_v34  ;;  %v1560_v38 = vld [vmem:[#allocation5 + $0x10] ss:$8 sps:$4 sm:$0xff]   ;;  %v1561_v39 = vld [vmem:[#allocation5 + $0x24] ss:$8 sps:$4 sm:$0xff]   ;;  %v1563_v42 = vld [vmem:[#allocation5 + $0x20] ss:$8 sps:$4 sm:$0xff]  }
  0x48   :  { %983 = vmatprep.subr.bf16.mxu0 %v1558_v36  ;;  %v1500_v40 = vld [vmem:[#allocation3 + $0x1a0] ss:$16 sps:$4 sm:$0xff]   ;;  %v1501_v41 = vld [vmem:[#allocation3 + $0x1c4] ss:$16 sps:$4 sm:$0xff]   ;;  %v1524_v5 = vld [vmem:[#allocation3 + $0xac] ss:$16 sps:$4 sm:$0xff]  }
  0x49   :  { %496 = vmatpush1.bf16.msra.mxu1 %v1473_v10  ;;  %v1564_v43 = vld [vmem:[#allocation5 + $0x34] ss:$8 sps:$4 sm:$0xff]   ;;  %v1503_v44 = vld [vmem:[#allocation3 + $0x1c0] ss:$16 sps:$4 sm:$0xff]   ;;  %v1567_v47 = vld [vmem:[#allocation5 + $0x44] ss:$8 sps:$4 sm:$0xff]  }
  0x4a   :  { %497 = vmatprep.subr.bf16.mxu1 %v1474_v11  ;;  %v1504_v45 = vld [vmem:[#allocation3 + $0x1e4] ss:$16 sps:$4 sm:$0xff]   ;;  %v1566_v46 = vld [vmem:[#allocation5 + $0x30] ss:$8 sps:$4 sm:$0xff]   ;;  %v1569_v50 = vld [vmem:[#allocation5 + $0x40] ss:$8 sps:$4 sm:$0xff]  }
  0x4b   :  { %984 = vmatpush1.bf16.msra.mxu0 %v1560_v38  ;;  %v1506_v48 = vld [vmem:[#allocation3 + $0x1e0] ss:$16 sps:$4 sm:$0xff]   ;;  %v1570_v52 = vld [vmem:[#allocation5 + $0x54] ss:$8 sps:$4 sm:$0xff]   ;;  %v1573_v55 = vld [vmem:[#allocation5 + $0x64] ss:$8 sps:$4 sm:$0xff]  }
  0x4c   :  { %985 = vmatprep.subr.bf16.mxu0 %v1561_v39  ;;  %v1572_v54 = vld [vmem:[#allocation5 + $0x50] ss:$8 sps:$4 sm:$0xff]   ;;  %v1575_v58 = vld [vmem:[#allocation5 + $0x60] ss:$8 sps:$4 sm:$0xff]   ;;  %v1576_v59 = vld [vmem:[#allocation5 + $0x74] ss:$8 sps:$4 sm:$0xff]  }
  0x4d   :  { %498 = vmatpush1.bf16.msra.mxu1 %v1476_v12  ;;  %v1578_v62 = vld [vmem:[#allocation5 + $0x70] ss:$8 sps:$4 sm:$0xff]   ;;  %v1579_v63 = vld [vmem:[#allocation5 + $0x84] ss:$8 sps:$4 sm:$0xff]   ;;  %v1581_v2 = vld [vmem:[#allocation5 + $0x80] ss:$8 sps:$4 sm:$0xff]  }
  0x4e   :  { %499 = vmatprep.subr.bf16.mxu1 %v1477_v13  ;;  %v1582_v3 = vld [vmem:[#allocation5 + $0x94] ss:$8 sps:$4 sm:$0xff]   ;;  %v1584_v6 = vld [vmem:[#allocation5 + $0x90] ss:$8 sps:$4 sm:$0xff]   ;;  %v1585_v7 = vld [vmem:[#allocation5 + $0xa4] ss:$8 sps:$4 sm:$0xff]  }
  0x4f   :  { %986 = vmatpush1.bf16.msra.mxu0 %v1563_v42  ;;  %v1522_v8 = vld [vmem:[#allocation3 + $0xa8] ss:$16 sps:$4 sm:$0xff]   ;;  %v1527_v9 = vld [vmem:[#allocation3 + $0xcc] ss:$16 sps:$4 sm:$0xff]   ;;  %v1651_v42 = vld [vmem:[#allocation7 + $0x40] sm:$0xff]  }
  0x50   :  { %987 = vmatprep.subr.bf16.mxu0 %v1564_v43  ;;  %v1587_v10 = vld [vmem:[#allocation5 + $0xa0] ss:$8 sps:$4 sm:$0xff]   ;;  %v1588_v11 = vld [vmem:[#allocation5 + $0xb4] ss:$8 sps:$4 sm:$0xff]   ;;  %v1590_v14 = vld [vmem:[#allocation5 + $0xb0] ss:$8 sps:$4 sm:$0xff]  }
  0x51   :  { %500 = vmatpush1.bf16.msra.mxu1 %v1479_v19  ;;  %v1525_v12 = vld [vmem:[#allocation3 + $0xc8] ss:$16 sps:$4 sm:$0xff]   ;;  %v1530_v13 = vld [vmem:[#allocation3 + $0xec] ss:$16 sps:$4 sm:$0xff]   ;;  %v1652_v43 = vld [vmem:[#allocation7] sm:$0xff]  }
  0x52   :  { %501 = vmatprep.subr.bf16.mxu1 %v1480_v21  ;;  %v1591_v15 = vld [vmem:[#allocation5 + $0xc4] ss:$8 sps:$4 sm:$0xff]   ;;  %v1528_v16 = vld [vmem:[#allocation3 + $0xe8] ss:$16 sps:$4 sm:$0xff]   ;;  %v1594_v19 = vld [vmem:[#allocation5 + $0xd4] ss:$8 sps:$4 sm:$0xff]  }
  0x53   :  { %988 = vmatpush1.bf16.msra.mxu0 %v1566_v46  ;;  %v1533_v17 = vld [vmem:[#allocation3 + $0x10c] ss:$16 sps:$4 sm:$0xff]   ;;  %v1593_v18 = vld [vmem:[#allocation5 + $0xc0] ss:$8 sps:$4 sm:$0xff]   ;;  %v1596_v36 = vld [vmem:[#allocation5 + $0xd0] ss:$8 sps:$4 sm:$0xff]  }
  0x54   :  { %989 = vmatprep.subr.bf16.mxu0 %v1567_v47  ;;  %v1531_v21 = vld [vmem:[#allocation3 + $0x108] ss:$16 sps:$4 sm:$0xff]   ;;  %v1554_v34 = vld [vmem:[#allocation3 + $0x1ec] ss:$16 sps:$4 sm:$0xff]   ;;  %v1656_v46 = vld [vmem:[#allocation7 + $0x10] sm:$0xff]  }
  0x55   :  { %502 = vmatpush1.bf16.msra.mxu1 %v1482_v22  ;;  %v1536_v22 = vld [vmem:[#allocation3 + $0x12c] ss:$16 sps:$4 sm:$0xff]   ;;  %v1549_v33 = vld [vmem:[#allocation3 + $0x1c8] ss:$16 sps:$4 sm:$0xff]  }
  0x56   :  { %503 = vmatprep.subr.bf16.mxu1 %v1483_v23  ;;  %v1534_v23 = vld [vmem:[#allocation3 + $0x128] ss:$16 sps:$4 sm:$0xff]   ;;  %v1600_v39 = vld [vmem:[#allocation5 + $0xf4] ss:$8 sps:$4 sm:$0xff]  }
  0x57   :  { %990 = vmatpush1.bf16.msra.mxu0 %v1569_v50  ;;  %v1599_v38 = vld [vmem:[#allocation5 + $0xe0] ss:$8 sps:$4 sm:$0xff]   ;;  %v1657_v47 = vld [vmem:[#allocation7 + $0x58] sm:$0xff]  }
  0x58   :  { %991 = vmatprep.subr.bf16.mxu0 %v1570_v52  ;;  %v1660_v50 = vld [vmem:[#allocation7 + $0x20] sm:$0xff]   ;;  %v147_v52 = vlaneseq }
  0x59   :  { %504 = vmatpush1.bf16.msra.mxu1 %v1485_v24  ;;  %v1539_v24 = vld [vmem:[#allocation3 + $0x14c] ss:$16 sps:$4 sm:$0xff]  }
  0x5a   :  { %505 = vmatprep.subr.bf16.mxu1 %v1486_v26  ;;  %v1542_v26 = vld [vmem:[#allocation3 + $0x16c] ss:$16 sps:$4 sm:$0xff]  }
  0x5b   :  { %992 = vmatpush1.bf16.msra.mxu0 %v1572_v54 }
  0x5c   :  { %993 = vmatprep.subr.bf16.mxu0 %v1573_v55  ;;  %v1849_v55 = vld [vmem:[%s1877_s2] sm:$0xf] }
  0x5d   :  { %506 = vmatpush1.bf16.msra.mxu1 %v1488_v27  ;;  %v1540_v27 = vld [vmem:[#allocation3 + $0x168] ss:$16 sps:$4 sm:$0xff]  }
  0x5e   :  { %507 = vmatprep.subr.bf16.mxu1 %v1489_v28  ;;  %v1545_v28 = vld [vmem:[#allocation3 + $0x18c] ss:$16 sps:$4 sm:$0xff]  }
  0x5f   :  { %994 = vmatpush1.bf16.msra.mxu0 %v1575_v58 }
  0x60   :  { %995 = vmatprep.subr.bf16.mxu0 %v1576_v59 }
  0x61   :  { %508 = vmatpush1.bf16.msra.mxu1 %v1491_v29  ;;  %v1543_v29 = vld [vmem:[#allocation3 + $0x188] ss:$16 sps:$4 sm:$0xff]  }
  0x62   :  { %509 = vmatprep.subr.bf16.mxu1 %v1492_v30  ;;  %v1548_v30 = vld [vmem:[#allocation3 + $0x1ac] ss:$16 sps:$4 sm:$0xff]  }
  0x63   :  { %996 = vmatpush1.bf16.msra.mxu0 %v1578_v62 }
  0x64   :  { %997 = vmatprep.subr.bf16.mxu0 %v1579_v63 }
  0x65   :  { %510 = vmatpush1.bf16.msra.mxu1 %v1494_v31  ;;  %v1546_v31 = vld [vmem:[#allocation3 + $0x1a8] ss:$16 sps:$4 sm:$0xff]  }
  0x66   :  { %511 = vmatprep.subr.bf16.mxu1 %v1495_v32  ;;  %v1551_v32 = vld [vmem:[#allocation3 + $0x1cc] ss:$16 sps:$4 sm:$0xff]  }
  0x67   :  { %998 = vmatpush1.bf16.msra.mxu0 %v1581_v2 }
  0x68   :  { %999 = vmatprep.subr.bf16.mxu0 %v1582_v3 }
  0x69   :  { %512 = vmatpush1.bf16.msra.mxu1 %v1497_v35  ;;  %v1552_v35 = vld [vmem:[#allocation3 + $0x1e8] ss:$16 sps:$4 sm:$0xff]  }
  0x6a   :  { %513 = vmatprep.subr.bf16.mxu1 %v1498_v37  ;;  %v1597_v37 = vld [vmem:[#allocation5 + $0xe4] ss:$8 sps:$4 sm:$0xff]  }
  0x6b   :  { %1000 = vmatpush1.bf16.msra.mxu0 %v1584_v6 }
  0x6c   :  { %1001 = vmatprep.subr.bf16.mxu0 %v1585_v7 }
  0x6d   :  { %514 = vmatpush1.bf16.msra.mxu1 %v1500_v40  ;;  %v1602_v40 = vld [vmem:[#allocation5 + $0xf0] ss:$8 sps:$4 sm:$0xff]  }
  0x6e   :  { %515 = vmatprep.subr.bf16.mxu1 %v1501_v41  ;;  %v1605_v41 = vld [vmem:[#allocation5 + $0x104] ss:$8 sps:$4 sm:$0xff]  }
  0x6f   :  { %1002 = vmatpush1.bf16.msra.mxu0 %v1587_v10  ;;  %v1608_v10 = vld [vmem:[#allocation5 + $0x114] ss:$8 sps:$4 sm:$0xff]  }
  0x70   :  { %1003 = vmatprep.subr.bf16.mxu0 %v1588_v11  ;;  %v1606_v11 = vld [vmem:[#allocation5 + $0x110] ss:$8 sps:$4 sm:$0xff]  }
  0x71   :  { %516 = vmatpush1.bf16.msra.mxu1 %v1503_v44  ;;  %v1653_v44 = vld [vmem:[#allocation7 + $0x48] sm:$0xff]  }
  0x72   :  { %517 = vmatprep.subr.bf16.mxu1 %v1504_v45  ;;  %v1654_v45 = vld [vmem:[#allocation7 + $0x8] sm:$0xff]  }
  0x73   :  { %1004 = vmatpush1.bf16.msra.mxu0 %v1590_v14  ;;  %v1614_v14 = vld [vmem:[#allocation5 + $0x134] ss:$8 sps:$4 sm:$0xff]  }
  0x74   :  { %1005 = vmatprep.subr.bf16.mxu0 %v1591_v15  ;;  %v1612_v15 = vld [vmem:[#allocation5 + $0x130] ss:$8 sps:$4 sm:$0xff]  }
  0x75   :  { %518 = vmatpush1.bf16.msra.mxu1 %v1506_v48  ;;  %v1658_v48 = vld [vmem:[#allocation7 + $0x18] sm:$0xff]  }
  0x76   :  { %530 = vmatprep.subr.bf16.mxu1 %v1509_v49  ;;  %v1659_v49 = vld [vmem:[#allocation7 + $0x60] sm:$0xff]  }
  0x77   :  { %1006 = vmatpush1.bf16.msra.mxu0 %v1593_v18  ;;  %v1620_v18 = vld [vmem:[#allocation5 + $0x154] ss:$8 sps:$4 sm:$0xff]  }
  0x78   :  { %520 = vmatmul.mubr.bf16.vlgmr.msra.gmra.mrb[0].mxu1 %v1835_v20  ;;  %1007 = vmatprep.subr.bf16.mxu0 %v1594_v19  ;;  %v1618_v19 = vld [vmem:[#allocation5 + $0x150] ss:$8 sps:$4 sm:$0xff]  }
  0x79   :  { %531 = vmatpush1.bf16.msra.mxu1 %v1507_v51  ;;  %562 = vmatprep.mubr.bf16.mxu1 %v1837_v25  ;;  %v1537_v25 = vld [vmem:[#allocation3 + $0x148] ss:$16 sps:$4 sm:$0xff]  }
  0x7a   :  { %532 = vmatprep.subr.bf16.mxu1 %v1512_v53  ;;  %v1661_v51 = vld [vmem:[#allocation7 + $0x68] sm:$0xff]   ;;  %v1843_v53 = vshrl.u32 %v147_v52, 7 }
  0x7b   :  { %1008 = vmatpush1.bf16.msra.mxu0 %v1596_v36 }
  0x7c   :  { %1009 = vmatprep.subr.bf16.mxu0 %v1597_v37  ;;  %v149_v54 = vsub.s32 0, %v1843_v53  ;;  %v157_v36 = vsub.s32 2, %v1843_v53  ;;  %v161_v37 = vsub.s32 3, %v1843_v53 }
  0x7d   :  { %533 = vmatpush1.bf16.msra.mxu1 %v1510_v56  ;;  %v153_v56 = vsub.s32 1, %v1843_v53 }
  0x7e   :  { %534 = vmatprep.subr.bf16.mxu1 %v1515_v57  ;;  %v150_v57 = vrot.slane %v1849_v55, %v149_v54 }
  0x7f   :  { %1010 = vmatpush1.bf16.msra.mxu0 %v1599_v38  ;;  %v154_v58 = vrot.slane %v1849_v55, %v153_v56  ;;  %v1642_v38 = vld [vmem:[#allocation5 + $0x1d0] ss:$8 sps:$4 sm:$0xff]  }
  0x80   :  { %1011 = vmatprep.subr.bf16.mxu0 %v1600_v39  ;;  %v158_v39 = vrot.slane %v1849_v55, %v157_v36 }
  0x81   :  { %535 = vmatpush1.bf16.msra.mxu1 %v1513_v60 }
  0x82   :  { %536 = vmatprep.subr.bf16.mxu1 %v1518_v61 }
  0x83   :  { %1012 = vmatpush1.bf16.msra.mxu0 %v1602_v40  ;;  %v1647_v40 = vld [vmem:[#allocation5 + $0x1e4] ss:$8 sps:$4 sm:$0xff]  }
  0x84   :  { %1024 = vmatprep.subr.bf16.mxu0 %v1605_v41  ;;  %v162_v41 = vrot.slane %v1849_v55, %v161_v37 }
  0x85   :  { %537 = vmatpush1.bf16.msra.mxu1 %v1516_v0 }
  0x86   :  { %538 = vmatprep.subr.bf16.mxu1 %v1521_v1 }
  0x89   :  { %539 = vmatpush1.bf16.msra.mxu1 %v1519_v4 }
  0x8a   :  { %540 = vmatprep.subr.bf16.mxu1 %v1524_v5 }
  0x8d   :  { %541 = vmatpush1.bf16.msra.mxu1 %v1522_v8 }
  0x8e   :  { %542 = vmatprep.subr.bf16.mxu1 %v1527_v9  ;;  %v1603_v9 = vld [vmem:[#allocation5 + $0x100] ss:$8 sps:$4 sm:$0xff]  }
  0x91   :  { %543 = vmatpush1.bf16.msra.mxu1 %v1525_v12  ;;  %v1611_v12 = vld [vmem:[#allocation5 + $0x124] ss:$8 sps:$4 sm:$0xff]  }
  0x92   :  { %544 = vmatprep.subr.bf16.mxu1 %v1530_v13  ;;  %v1609_v13 = vld [vmem:[#allocation5 + $0x120] ss:$8 sps:$4 sm:$0xff]  }
  0x95   :  { %545 = vmatpush1.bf16.msra.mxu1 %v1528_v16  ;;  %v1617_v16 = vld [vmem:[#allocation5 + $0x144] ss:$8 sps:$4 sm:$0xff]  }
  0x96   :  { %546 = vmatprep.subr.bf16.mxu1 %v1533_v17  ;;  %v1615_v17 = vld [vmem:[#allocation5 + $0x140] ss:$8 sps:$4 sm:$0xff]  }
  0x99   :  { %547 = vmatpush1.bf16.msra.mxu1 %v1531_v21  ;;  %v1623_v21 = vld [vmem:[#allocation5 + $0x164] ss:$8 sps:$4 sm:$0xff]  }
  0x9a   :  { %548 = vmatprep.subr.bf16.mxu1 %v1536_v22  ;;  %v1621_v22 = vld [vmem:[#allocation5 + $0x160] ss:$8 sps:$4 sm:$0xff]  }
  0x9d   :  { %549 = vmatpush1.bf16.msra.mxu1 %v1534_v23  ;;  %v1626_v23 = vld [vmem:[#allocation5 + $0x174] ss:$8 sps:$4 sm:$0xff]  }
  0x9e   :  { %550 = vmatprep.subr.bf16.mxu1 %v1539_v24  ;;  %v1624_v24 = vld [vmem:[#allocation5 + $0x170] ss:$8 sps:$4 sm:$0xff]  }
  0xa1   :  { %551 = vmatpush1.bf16.msra.mxu1 %v1537_v25  ;;  %v1629_v25 = vld [vmem:[#allocation5 + $0x184] ss:$8 sps:$4 sm:$0xff]  }
  0xa2   :  { %552 = vmatprep.subr.bf16.mxu1 %v1542_v26  ;;  %v1627_v26 = vld [vmem:[#allocation5 + $0x180] ss:$8 sps:$4 sm:$0xff]  }
  0xa5   :  { %553 = vmatpush1.bf16.msra.mxu1 %v1540_v27  ;;  %v1632_v27 = vld [vmem:[#allocation5 + $0x194] ss:$8 sps:$4 sm:$0xff]  }
  0xa6   :  { %554 = vmatprep.subr.bf16.mxu1 %v1545_v28  ;;  %v1630_v28 = vld [vmem:[#allocation5 + $0x190] ss:$8 sps:$4 sm:$0xff]  }
  0xa9   :  { %555 = vmatpush1.bf16.msra.mxu1 %v1543_v29  ;;  %v1635_v29 = vld [vmem:[#allocation5 + $0x1a4] ss:$8 sps:$4 sm:$0xff]  }
  0xaa   :  { %556 = vmatprep.subr.bf16.mxu1 %v1548_v30  ;;  %v1633_v30 = vld [vmem:[#allocation5 + $0x1a0] ss:$8 sps:$4 sm:$0xff]  }
  0xad   :  { %557 = vmatpush1.bf16.msra.mxu1 %v1546_v31  ;;  %v1638_v31 = vld [vmem:[#allocation5 + $0x1b4] ss:$8 sps:$4 sm:$0xff]  }
  0xae   :  { %558 = vmatprep.subr.bf16.mxu1 %v1551_v32  ;;  %v1636_v32 = vld [vmem:[#allocation5 + $0x1b0] ss:$8 sps:$4 sm:$0xff]  }
  0xb1   :  { %559 = vmatpush1.bf16.msra.mxu1 %v1549_v33  ;;  %v1641_v33 = vld [vmem:[#allocation5 + $0x1c4] ss:$8 sps:$4 sm:$0xff]  }
  0xb2   :  { %560 = vmatprep.subr.bf16.mxu1 %v1554_v34  ;;  %v1639_v34 = vld [vmem:[#allocation5 + $0x1c0] ss:$8 sps:$4 sm:$0xff]  }
  0xb5   :  { %561 = vmatpush1.bf16.msra.mxu1 %v1552_v35  ;;  %v1644_v35 = vld [vmem:[#allocation5 + $0x1d4] ss:$8 sps:$4 sm:$0xff]  }
  0xb6   :  { %1419 = vmatprep.subr.bf16.mxu1 %v1651_v42 }
  0xb8   :  { %563 = vmatmul.mubr.bf16.vlgmr.msra.gmra.mrb[4].mxu1 %v1835_v20  ;;  %v1655_v20 = vld [vmem:[#allocation7 + $0x50] sm:$0xff]  }
  0xb9   :  { %1420 = vmatpush3.bf16.msra.mxu1 %v1652_v43  ;;  %v1645_v43 = vld [vmem:[#allocation5 + $0x1e0] ss:$8 sps:$4 sm:$0xff]  }
  0xba   :  { %1421 = vmatprep.subr.bf16.mxu1 %v1653_v44 }
  0xbd   :  { %1422 = vmatpush3.bf16.msra.mxu1 %v1654_v45 }
  0xbe   :  { %1423 = vmatprep.subr.bf16.mxu1 %v1655_v20  ;;  %v1650_v20 = vld [vmem:[#allocation5 + $0x1f4] ss:$8 sps:$4 sm:$0xff]  }
  0xc1   :  { %1424 = vmatpush3.bf16.msra.mxu1 %v1656_v46 }
  0xc2   :  { %1425 = vmatprep.subr.bf16.mxu1 %v1657_v47 }
  0xc5   :  { %1426 = vmatpush3.bf16.msra.mxu1 %v1658_v48 }
  0xc6   :  { %1427 = vmatprep.subr.bf16.mxu1 %v1659_v49 }
  0xc9   :  { %1428 = vmatpush3.bf16.msra.mxu1 %v1660_v50 }
  0xca   :  { %1429 = vmatprep.subr.bf16.mxu1 %v1661_v51  ;;  %v1648_v51 = vld [vmem:[#allocation5 + $0x1f0] ss:$8 sps:$4 sm:$0xff]  }
 0x14b   :  { %v521_v59 = vpop.f32.mrb[0].mxu1 }
 0x14c   :  { %v522_v60 = vadd.f32 %v521_v59, %v150_v57  ;;  %v523_v61 = vpop.f32.mrb[1].mxu1 }
 0x14d   :  { %v524_v62 = vadd.f32 %v523_v61, %v154_v58  ;;  %v525_v63 = vpop.f32.mrb[2].mxu1  ;;  %v1662_v61 = vld [vmem:[#allocation7 + $0x28] sm:$0xff]  }
 0x14e   :  { %v573_v0 = vmax.f32 %v522_v60, 0.0  ;;  %v526_v1 = vadd.f32 %v525_v63, %v150_v57  ;;  %v527_v2 = vpop.f32.mrb[3].mxu1  ;;  %1430 = vmatpush3.bf16.msra.mxu1 %v1662_v61  ;;  %v1664_v63 = vld [vmem:[#allocation7 + $0x30] sm:$0xff]  }
 0x14f   :  { %v528_v3 = vadd.f32 %v527_v2, %v154_v58  ;;  %v574_v5 = vmax.f32 %v524_v62, 0.0  ;;  %v1663_v62 = vld [vmem:[#allocation7 + $0x70] sm:$0xff]  }
 0x150   :  { %v577_v4 = vmax.f32 %v526_v1, 0.0  ;;  %1431 = vmatprep.subr.bf16.mxu1 %v1663_v62  ;;  %v1666_v1 = vld [vmem:[#allocation7 + $0x38] sm:$0xff]   ;;  %v649_v2 = vld [vmem:[%s1879_s4] sm:$0x3] }
 0x151   :  { %v578_v6 = vmax.f32 %v528_v3, 0.0  ;;  %v654_v3 = vrot.slane %v649_v2, %v149_v54 }
 0x152   :  { %v581_v7 = vpack.c.bf16 %v577_v4, %v573_v0  ;;  %1432 = vmatpush3.bf16.msra.mxu1 %v1664_v63  ;;  %v1665_v0 = vld [vmem:[#allocation7 + $0x78] sm:$0xff]   ;;  %v658_v4 = vrot.slane %v649_v2, %v153_v56 }
 0x153   :  { %v582_v8 = vpack.c.bf16 %v578_v6, %v574_v5  ;;  %1433 = vmatprep.subr.bf16.mxu1 %v1665_v0 }
 0x155   :  { %1013 = vmatprep.mubr.bf16.mxu0 %v582_v8 }
 0x156   :  { %1014 = vmatmul.mubr.bf16.vlgmr.msra.gmra.mrb[0].mxu0 %v581_v7  ;;  %1434 = vmatpush3.bf16.msra.mxu1 %v1666_v1 }
 0x157   :  { %1025 = vmatpush1.bf16.msra.mxu0 %v1603_v9 }
 0x158   :  { %1026 = vmatprep.subr.bf16.mxu0 %v1608_v10 }
 0x15b   :  { %1027 = vmatpush1.bf16.msra.mxu0 %v1606_v11 }
 0x15c   :  { %1028 = vmatprep.subr.bf16.mxu0 %v1611_v12 }
 0x15f   :  { %1029 = vmatpush1.bf16.msra.mxu0 %v1609_v13 }
 0x160   :  { %1030 = vmatprep.subr.bf16.mxu0 %v1614_v14 }
 0x163   :  { %1031 = vmatpush1.bf16.msra.mxu0 %v1612_v15 }
 0x164   :  { %1032 = vmatprep.subr.bf16.mxu0 %v1617_v16 }
 0x167   :  { %1033 = vmatpush1.bf16.msra.mxu0 %v1615_v17 }
 0x168   :  { %1034 = vmatprep.subr.bf16.mxu0 %v1620_v18 }
 0x16b   :  { %1035 = vmatpush1.bf16.msra.mxu0 %v1618_v19 }
 0x16c   :  { %1036 = vmatprep.subr.bf16.mxu0 %v1623_v21  ;;  %v1393_v21 = vld [vmem:[%s1881_s6] ss:$0 sm:$0xff] }
 0x16f   :  { %1037 = vmatpush1.bf16.msra.mxu0 %v1621_v22 }
 0x170   :  { %1038 = vmatprep.subr.bf16.mxu0 %v1626_v23 }
 0x173   :  { %1039 = vmatpush1.bf16.msra.mxu0 %v1624_v24 }
 0x174   :  { %1040 = vmatprep.subr.bf16.mxu0 %v1629_v25 }
 0x177   :  { %1041 = vmatpush1.bf16.msra.mxu0 %v1627_v26 }
 0x178   :  { %1042 = vmatprep.subr.bf16.mxu0 %v1632_v27 }
 0x17b   :  { %1043 = vmatpush1.bf16.msra.mxu0 %v1630_v28 }
 0x17c   :  { %1044 = vmatprep.subr.bf16.mxu0 %v1635_v29 }
 0x17f   :  { %1045 = vmatpush1.bf16.msra.mxu0 %v1633_v30 }
 0x180   :  { %1046 = vmatprep.subr.bf16.mxu0 %v1638_v31 }
 0x183   :  { %1047 = vmatpush1.bf16.msra.mxu0 %v1636_v32 }
 0x184   :  { %1048 = vmatprep.subr.bf16.mxu0 %v1641_v33 }
 0x187   :  { %1049 = vmatpush1.bf16.msra.mxu0 %v1639_v34 }
 0x188   :  { %1050 = vmatprep.subr.bf16.mxu0 %v1644_v35 }
 0x18b   :  { %v564_v42 = vpop.f32.mrb[4].mxu1  ;;  %1051 = vmatpush1.bf16.msra.mxu0 %v1642_v38 }
 0x18c   :  { %v565_v44 = vadd.f32 %v564_v42, %v158_v39  ;;  %v566_v45 = vpop.f32.mrb[5].mxu1  ;;  %1052 = vmatprep.subr.bf16.mxu0 %v1647_v40 }
 0x18d   :  { %v567_v46 = vadd.f32 %v566_v45, %v162_v41  ;;  %v568_v47 = vpop.f32.mrb[6].mxu1 }
 0x18e   :  { %v569_v48 = vadd.f32 %v568_v47, %v158_v39  ;;  %v570_v49 = vpop.f32.mrb[7].mxu1  ;;  %v575_v52 = vmax.f32 %v565_v44, 0.0 }
 0x18f   :  { %v571_v50 = vadd.f32 %v570_v49, %v162_v41  ;;  %1053 = vmatpush1.bf16.msra.mxu0 %v1645_v43  ;;  %v576_v58 = vmax.f32 %v567_v46, 0.0 }
 0x190   :  { %v579_v57 = vmax.f32 %v569_v48, 0.0  ;;  %1054 = vmatprep.subr.bf16.mxu0 %v1650_v20 }
 0x191   :  { %v580_v59 = vmax.f32 %v571_v50, 0.0 }
 0x192   :  { %v583_v55 = vpack.c.bf16 %v579_v57, %v575_v52 }
 0x193   :  { %v584_v60 = vpack.c.bf16 %v580_v59, %v576_v58  ;;  %1055 = vmatpush1.bf16.msra.mxu0 %v1648_v51 }
 0x195   :  { %1056 = vmatprep.mubr.bf16.mxu0 %v584_v60 }
 0x196   :  { %1057 = vmatmul.mubr.bf16.vlgmr.msra.gmra.mrb[0].mxu0 %v583_v55 }
 0x269   :  { %v1058_v5 = vpop.f32.mrb[0].mxu0 }
 0x26a   :  { %v1441_v6 = vadd.f32 %v1058_v5, %v654_v3  ;;  %v1060_v7 = vpop.f32.mrb[1].mxu0 }
 0x26b   :  { %v1442_v8 = vadd.f32 %v1060_v7, %v658_v4  ;;  %v1062_v9 = vpop.f32.mrb[2].mxu0 }
 0x26c   :  { %v1443_v10 = vadd.f32 %v1062_v9, %v654_v3  ;;  %v1064_v11 = vpop.f32.mrb[3].mxu0  ;;  %v1067_v13 = vmax.f32 %v1441_v6, 0.0 }
 0x26d   :  { %v1444_v12 = vadd.f32 %v1064_v11, %v658_v4  ;;  %v1068_v15 = vmax.f32 %v1442_v8, 0.0 }
 0x26e   :  { %v1069_v14 = vmax.f32 %v1443_v10, 0.0 }
 0x26f   :  { %v1070_v16 = vmax.f32 %v1444_v12, 0.0 }
 0x270   :  { %v1071_v17 = vpack.c.bf16 %v1069_v14, %v1067_v13 }
 0x271   :  { %v1072_v18 = vpack.c.bf16 %v1070_v16, %v1068_v15 }
 0x273   :  { %1240 = vmatprep.mubr.bf16.mxu1 %v1072_v18 }
 0x274   :  { %1241 = vmatmul.mubr.bf16.vlgmr.msra.gmra.mrb[8].mxu1 %v1071_v17 }
 0x347   :  { %v1435_v54 = vpop.f32.mrb[8].mxu1 }
 0x348   :  { %v1436_v19 = vpop.f32.mrb[9].mxu1 }
 0x349   :  { %v1437_v53 = vadd.f32 %v1436_v19, %v1435_v54  ;;  %v1438_v56 = vpop.f32.mrb[10].mxu1 }
 0x34a   :  { %v1439_v22 = vpop.f32.mrb[11].mxu1 }
 0x34b   :  { %v1440_v23 = vadd.f32 %v1439_v22, %v1438_v56  ;;  %v1243_v24 = vadd.f32 %v1437_v53, %v1393_v21 }
 0x34d   :  { %v1246_v25 = vadd.f32 %v1440_v23, %v1393_v21 }
 0x34f   :  { %v1417_v26 = vpack.c.bf16 %v1246_v25, %v1243_v24 }
 0x351   :  { %1418 = vst [vmem:[%s1882_s7] sm:$0xff] %v1417_v26  }
 0x352   :  { %1263 = vsyncpa [#allocation4], 1 }
 0x353   :  { %1264 = vsyncpa [#allocation6], 1 }

</bundles_post_ra>
